<compile_context>
chip_gen: v6e
topology: v6e:2x2x1
jax: 0.10.0
libtpu: 0.0.40
codegen_flags: <defaults>
</compile_context>

<pallas_src>
import functools
import math

import jax
import jax.numpy as jnp
from jax import lax
from jax.experimental import pallas as pl
from jax.experimental.pallas import tpu as pltpu


def attention_pool_kernel(x_ref, pos0_ref, pos_sp_ref, wqkv_ref, bqkv_ref,
                          wc_ref, bc_ref, hmask_ref, bmask_ref, out_ref,
                          *, b_blk, hw, num_heads):
    f32 = jnp.float32
    c = wqkv_ref.shape[0]

    x = x_ref[...]                                        # [Bb, HW, C] compute dtype

    # ---- token 0 (spatial mean) in f32 on the XLU (MXU is the busy unit)
    means = jnp.mean(x.astype(f32), axis=1)               # [Bb, C] f32
    tok0 = (means + pos0_ref[...]).astype(x.dtype)        # [Bb, C]

    # ---- spatial tokens + positional embedding, one tall aligned operand
    xsp = (x + pos_sp_ref[...][None, :, :]).reshape(b_blk * hw, c)   # [Bb*HW, C]

    # ---- fused projections: 2 MXU dots (wide N=3C), slice the f32 results.
    # (attention scale already folded into the q/k weight & bias slices)
    qkv0 = jnp.dot(tok0, wqkv_ref[...],
                   preferred_element_type=f32) + bqkv_ref[...]       # [Bb, 3C]
    qkv_sp = jnp.dot(xsp, wqkv_ref[...],
                     preferred_element_type=f32) + bqkv_ref[...]     # [Bb*HW, 3C]
    q0 = qkv0[:, 0 * c:1 * c]                              # [Bb, C]
    k0 = qkv0[:, 1 * c:2 * c]                              # [Bb, C]
    v0 = qkv0[:, 2 * c:3 * c]                              # [Bb, C]
    ksp = qkv_sp[:, 1 * c:2 * c]                           # [Bb*HW, C]
    vsp = qkv_sp[:, 2 * c:3 * c]                           # [Bb*HW, C]

    # ---- all-head logits for the query token only, flattened to one wide dot
    hmask = hmask_ref[...]                                 # [H, C] block-diag
    qhead = q0[:, None, :] * hmask[None, :, :]             # [Bb, H, C]
    q_all = qhead.reshape(b_blk * num_heads, c)            # [Bb*H, C]
    logits_sp = lax.dot_general(q_all, ksp, (((1,), (1,)), ((), ())),
                                preferred_element_type=f32)           # [Bb*H, Bb*HW]
    logits_sp = logits_sp + bmask_ref[...]                 # kill cross-batch terms
    logit0 = jnp.sum(qhead * k0[:, None, :], axis=-1)      # [Bb, H]
    logit0 = logit0.reshape(b_blk * num_heads, 1)          # [Bb*H, 1]

    # ---- softmax over the HW spatial keys + the mean-token key (f32)
    m = jnp.maximum(jnp.max(logits_sp, axis=-1, keepdims=True), logit0)
    p_sp = jnp.exp(logits_sp - m)                          # cross-batch -> exp(-1e30)=0
    p0 = jnp.exp(logit0 - m)
    denom = p0 + jnp.sum(p_sp, axis=-1, keepdims=True)
    inv = pl.reciprocal(denom, approx=True)                # EUP slot
    inv = inv * (2.0 - denom * inv)                        # one Newton step: f32 accuracy
    w_sp = p_sp * inv                                      # [Bb*H, Bb*HW]
    w0 = p0 * inv                                          # [Bb*H, 1]

    # ---- attention output for token 0: one wide PV dot, then head pick
    a = jnp.dot(w_sp, vsp, preferred_element_type=f32)     # [Bb*H, C]
    a3 = a.reshape(b_blk, num_heads, c)
    a3 = a3 + w0.reshape(b_blk, num_heads, 1) * v0[:, None, :]       # mean-token value
    a0 = jnp.sum(a3 * hmask[None, :, :], axis=1)           # [Bb, C] block-diag pick

    # ---- output projection for token 0 only; lane-dense store
    y = jnp.dot(a0.astype(x.dtype), wc_ref[...],
                preferred_element_type=f32) + bc_ref[...]             # [Bb, D]
    out_ref[...] = y.reshape(1, 1, -1).astype(out_ref.dtype)


def _const_spec(arr):
    # Constant-per-grid operands (weights, positional embedding, masks).
    # Same block every step -> Pallas does not re-DMA revisited blocks.
    zeros = (0,) * arr.ndim
    return pl.BlockSpec(arr.shape, lambda *_: zeros)


def _pick_batch_block(batch, max_block):
    divisors = [d for d in range(1, batch + 1) if batch % d == 0 and d <= max_block]
    # Keep >= 2 grid steps when possible so v7x's two TensorCores both get work
    # (costs nothing on v5e/v6e).
    two_step = [d for d in divisors if batch // d >= 2]
    return max(two_step) if two_step else max(divisors)


def _default_compute_dtype():
    kind = jax.devices()[0].device_kind.lower()
    # v5e (and older) have no bf16 VPU/EUP -> f32 compute; v6e/v7x -> bf16.
    if any(s in kind for s in ("v2", "v3", "v5 lite", "v5e", "v5litepod")):
        return jnp.float32
    return jnp.bfloat16


def attention_pool_2d(x_nchw, pos_emb, w_qkv, b_qkv, w_c, b_c, num_heads_channels,
                      *, compute_dtype=None, max_batch_block=64):
    """pos_emb: [C, T]; w_qkv: [3C, C]; w_c: [D, C] (1x1 conv weights squeezed)."""
    b, c, h, w = x_nchw.shape
    hw = h * w
    d_out = w_c.shape[0]
    assert c % num_heads_channels == 0
    num_heads = c // num_heads_channels
    b_blk = _pick_batch_block(b, max_batch_block)
    num_steps = b // b_blk

    if compute_dtype is None:
        compute_dtype = _default_compute_dtype()
    cdt = jnp.dtype(compute_dtype)
    f32 = jnp.float32
    scale = 1.0 / math.sqrt(math.sqrt(num_heads_channels))

    # --- layout plumbing only: token-major activations, [in, out] weights ---
    x_hwc = jnp.transpose(x_nchw.reshape(b, c, hw), (0, 2, 1)).astype(cdt)  # [B, HW, C]
    pos0 = pos_emb[:, 0:1].T.astype(f32)                   # [1, C]  mean-token position
    pos_sp = pos_emb[:, 1:].T.astype(cdt)                  # [HW, C] spatial positions

    # fused qkv weight; attention scale folded into the q/k slices (trace time)
    wq = w_qkv[0 * c:1 * c] * scale
    wk = w_qkv[1 * c:2 * c] * scale
    wv = w_qkv[2 * c:3 * c]
    bq = b_qkv[0 * c:1 * c] * scale
    bk = b_qkv[1 * c:2 * c] * scale
    bv = b_qkv[2 * c:3 * c]
    w_qkv_f = jnp.concatenate([wq, wk, wv], axis=0).T.astype(cdt)     # [C, 3C]
    b_qkv_f = jnp.concatenate([bq, bk, bv]).reshape(1, 3 * c).astype(f32)
    w_cp = w_c.T.astype(cdt)                               # [C, D]
    b_cp = b_c.reshape(1, d_out).astype(f32)

    # block-diagonal head mask and additive cross-batch mask for flattened attention
    hmask = jnp.repeat(jnp.eye(num_heads, dtype=f32), num_heads_channels, axis=1)
    eye_b = jnp.eye(b_blk, dtype=f32)
    bmask = (jnp.repeat(jnp.repeat(eye_b, num_heads, axis=0), hw, axis=1) - 1.0) * 1e30

    consts = (pos0, pos_sp, w_qkv_f, b_qkv_f, w_cp, b_cp, hmask, bmask)
    kernel = functools.partial(attention_pool_kernel,
                               b_blk=b_blk, hw=hw, num_heads=num_heads)

    in_specs = [pl.BlockSpec((b_blk, hw, c), lambda i: (i, 0, 0))]
    in_specs += [_const_spec(a) for a in consts]

    out = pl.pallas_call(
        kernel,
        # lane-dense output slab: last dim = b_blk*d_out (128 when b_blk=8, d_out=16)
        out_shape=jax.ShapeDtypeStruct((num_steps, 1, b_blk * d_out), jnp.float32),
        grid=(num_steps,),
        in_specs=in_specs,
        out_specs=pl.BlockSpec((1, 1, b_blk * d_out), lambda i: (i, 0, 0)),
        compiler_params=pltpu.CompilerParams(
            dimension_semantics=("parallel",)),
    )(x_hwc, *consts)
    return out.reshape(b, d_out)


def reference_attention_pool_2d(x_nchw, pos_emb, w_qkv, b_qkv, w_c, b_c,
                                num_heads_channels):
    """Pure-JAX transliteration of the PyTorch forward (for verification)."""
    b, c, _, _ = x_nchw.shape
    x = x_nchw.reshape(b, c, -1)
    x = jnp.concatenate([x.mean(axis=-1, keepdims=True), x], axis=-1)
    x = x + pos_emb[None, :, :]
    qkv = jnp.einsum('oc,bct->bot', w_qkv, x) + b_qkv[None, :, None]
    num_heads = c // num_heads_channels
    ch = num_heads_channels
    t = x.shape[-1]
    q, k, v = jnp.split(qkv, 3, axis=1)
    scale = 1.0 / math.sqrt(math.sqrt(ch))
    q = (q * scale).reshape(b * num_heads, ch, t)
    k = (k * scale).reshape(b * num_heads, ch, t)
    v = v.reshape(b * num_heads, ch, t)
    wgt = jnp.einsum('bct,bcs->bts', q, k)
    wgt = jax.nn.softmax(wgt.astype(jnp.float32), axis=-1)
    a = jnp.einsum('bts,bcs->bct', wgt, v).reshape(b, c, t)
    out = jnp.einsum('oc,bct->bot', w_c, a) + b_c[None, :, None]
    return out[:, :, 0]


if __name__ == "__main__":
    # module config: AttentionPool2d(spacial_dim=4, embed_dim=32,
    #                                num_heads_channels=8, output_dim=16)
    spacial_dim = 4
    embed_dim = 32
    num_heads_channels = 8
    output_dim = 16
    T = spacial_dim ** 2 + 1

    key = jax.random.PRNGKey(0)
    kx, kpos, kwq, kbq, kwc, kbc = jax.random.split(key, 6)

    pos_emb = jax.random.normal(kpos, (embed_dim, T),
                                dtype=jnp.float32) / embed_dim ** 0.5
    w_qkv = jax.random.normal(kwq, (3 * embed_dim, embed_dim),
                              dtype=jnp.float32) * (1.0 / math.sqrt(embed_dim))
    b_qkv = jax.random.normal(kbq, (3 * embed_dim,), dtype=jnp.float32) * 0.02
    w_c = jax.random.normal(kwc, (output_dim, embed_dim),
                            dtype=jnp.float32) * (1.0 / math.sqrt(embed_dim))
    b_c = jax.random.normal(kbc, (output_dim,), dtype=jnp.float32) * 0.02

    # (batch, compute dtype, elementwise tol | None -> relative-norm check)
    checks = [
        (2, jnp.float32, 1e-3),     # b_blk=1, grid=2 (small-batch path)
        (16, jnp.float32, 1e-3),    # b_blk=8, grid=2 -> 128-lane output slab
        (16, jnp.bfloat16, None),   # bf16 operand fast path (v6e/v7x MXU native)
    ]
    for batch, cdt, tol in checks:
        x = jax.random.normal(jax.random.fold_in(kx, batch),
                              (batch, embed_dim, spacial_dim, spacial_dim),
                              dtype=jnp.float32)
        out = attention_pool_2d(x, pos_emb, w_qkv, b_qkv, w_c, b_c,
                                num_heads_channels, compute_dtype=cdt)
        out = jax.block_until_ready(out)
        ref = reference_attention_pool_2d(x, pos_emb, w_qkv, b_qkv, w_c, b_c,
                                          num_heads_channels)
        assert out.shape == (batch, output_dim)
        if tol is not None:
            err = float(jnp.max(jnp.abs(out - ref)))
            assert jnp.allclose(out, ref, atol=tol, rtol=tol), (
                f"f32 path max abs err = {err}")
        else:
            rel = float(jnp.linalg.norm(out - ref) / jnp.linalg.norm(ref))
            assert rel < 5e-2, f"bf16 path relative error = {rel}"
    print("KERNEL_OK")
</pallas_src>

<mosaic_0001>
module attributes {stable_mosaic.version = 11 : i64} {
  func.func @attention_pool_kernel(%arg0: i32, %arg1: memref<1x16x32xf32, #tpu.memory_space<vmem>>, %arg2: memref<1x32xf32, #tpu.memory_space<vmem>>, %arg3: memref<16x32xf32, #tpu.memory_space<vmem>>, %arg4: memref<32x96xf32, #tpu.memory_space<vmem>>, %arg5: memref<1x96xf32, #tpu.memory_space<vmem>>, %arg6: memref<32x16xf32, #tpu.memory_space<vmem>>, %arg7: memref<1x16xf32, #tpu.memory_space<vmem>>, %arg8: memref<4x32xf32, #tpu.memory_space<vmem>>, %arg9: memref<4x16xf32, #tpu.memory_space<vmem>>, %arg10: memref<1x1x16xf32, #tpu.memory_space<vmem>>) attributes {dimension_semantics = [#tpu.dimension_semantics<parallel>], iteration_bounds = array<i64: 2>, scalar_prefetch = 0 : i64, scratch_operands = 0 : i64, tpu.core_type = #tpu.core_type<tc>, window_params = [{transform_indices = @transform_0, window_bounds = array<i64: 1, 16, 32>}, {pipeline_mode = #tpu.pipeline_mode<synchronous>, transform_indices = @transform_1, window_bounds = array<i64: 1, 32>}, {pipeline_mode = #tpu.pipeline_mode<synchronous>, transform_indices = @transform_2, window_bounds = array<i64: 16, 32>}, {pipeline_mode = #tpu.pipeline_mode<synchronous>, transform_indices = @transform_3, window_bounds = array<i64: 32, 96>}, {pipeline_mode = #tpu.pipeline_mode<synchronous>, transform_indices = @transform_4, window_bounds = array<i64: 1, 96>}, {pipeline_mode = #tpu.pipeline_mode<synchronous>, transform_indices = @transform_5, window_bounds = array<i64: 32, 16>}, {pipeline_mode = #tpu.pipeline_mode<synchronous>, transform_indices = @transform_6, window_bounds = array<i64: 1, 16>}, {pipeline_mode = #tpu.pipeline_mode<synchronous>, transform_indices = @transform_7, window_bounds = array<i64: 4, 32>}, {pipeline_mode = #tpu.pipeline_mode<synchronous>, transform_indices = @transform_8, window_bounds = array<i64: 4, 16>}, {transform_indices = @transform_9, window_bounds = array<i64: 1, 1, 16>}]} {
    %c0 = arith.constant 0 : index
    %c0_0 = arith.constant 0 : index
    %c0_1 = arith.constant 0 : index
    %0 = vector.load %arg1[%c0, %c0_0, %c0_1] : memref<1x16x32xf32, #tpu.memory_space<vmem>>, vector<1x16x32xf32>
    %cst = arith.constant dense<0.000000e+00> : vector<1x32xf32>
    %1 = vector.multi_reduction <add>, %0, %cst [1] : vector<1x16x32xf32> to vector<1x32xf32>
    %cst_2 = arith.constant 1.600000e+01 : f32
    %2 = vector.broadcast %cst_2 : f32 to vector<1x32xf32>
    %3 = arith.divf %1, %2 : vector<1x32xf32>
    %c0_3 = arith.constant 0 : index
    %c0_4 = arith.constant 0 : index
    %4 = vector.load %arg2[%c0_3, %c0_4] : memref<1x32xf32, #tpu.memory_space<vmem>>, vector<1x32xf32>
    %5 = arith.addf %3, %4 : vector<1x32xf32>
    %c0_5 = arith.constant 0 : index
    %c0_6 = arith.constant 0 : index
    %6 = vector.load %arg3[%c0_5, %c0_6] : memref<16x32xf32, #tpu.memory_space<vmem>>, vector<16x32xf32>
    %7 = vector.shape_cast %6 : vector<16x32xf32> to vector<1x16x32xf32>
    %8 = arith.addf %0, %7 : vector<1x16x32xf32>
    %9 = vector.shape_cast %8 : vector<1x16x32xf32> to vector<16x32xf32>
    %c0_7 = arith.constant 0 : index
    %c0_8 = arith.constant 0 : index
    %10 = vector.load %arg4[%c0_7, %c0_8] : memref<32x96xf32, #tpu.memory_space<vmem>>, vector<32x96xf32>
    %cst_9 = arith.constant dense<0.000000e+00> : vector<1x96xf32>
    %11 = tpu.matmul %5, %10, %cst_9 {dimension_numbers = #tpu.dot_dimension_numbers<[1], [0], [0], [1], [0, 0, 1, 1], [], []>} : vector<1x32xf32>, vector<32x96xf32>, vector<1x96xf32> -> vector<1x96xf32>
    %c0_10 = arith.constant 0 : index
    %c0_11 = arith.constant 0 : index
    %12 = vector.load %arg5[%c0_10, %c0_11] : memref<1x96xf32, #tpu.memory_space<vmem>>, vector<1x96xf32>
    %13 = arith.addf %11, %12 : vector<1x96xf32>
    %c0_12 = arith.constant 0 : index
    %c0_13 = arith.constant 0 : index
    %14 = vector.load %arg4[%c0_12, %c0_13] : memref<32x96xf32, #tpu.memory_space<vmem>>, vector<32x96xf32>
    %cst_14 = arith.constant dense<0.000000e+00> : vector<16x96xf32>
    %15 = tpu.matmul %9, %14, %cst_14 {dimension_numbers = #tpu.dot_dimension_numbers<[1], [0], [0], [1], [0, 0, 1, 1], [], []>} : vector<16x32xf32>, vector<32x96xf32>, vector<16x96xf32> -> vector<16x96xf32>
    %c0_15 = arith.constant 0 : index
    %c0_16 = arith.constant 0 : index
    %16 = vector.load %arg5[%c0_15, %c0_16] : memref<1x96xf32, #tpu.memory_space<vmem>>, vector<1x96xf32>
    %17 = vector.broadcast %16 : vector<1x96xf32> to vector<16x96xf32>
    %18 = arith.addf %15, %17 : vector<16x96xf32>
    %19 = vector.extract_strided_slice %13 {offsets = [0, 0], sizes = [1, 32], strides = [1, 1]} : vector<1x96xf32> to vector<1x32xf32>
    %20 = vector.extract_strided_slice %13 {offsets = [0, 32], sizes = [1, 32], strides = [1, 1]} : vector<1x96xf32> to vector<1x32xf32>
    %21 = vector.extract_strided_slice %13 {offsets = [0, 64], sizes = [1, 32], strides = [1, 1]} : vector<1x96xf32> to vector<1x32xf32>
    %22 = vector.extract_strided_slice %18 {offsets = [0, 32], sizes = [16, 32], strides = [1, 1]} : vector<16x96xf32> to vector<16x32xf32>
    %23 = vector.extract_strided_slice %18 {offsets = [0, 64], sizes = [16, 32], strides = [1, 1]} : vector<16x96xf32> to vector<16x32xf32>
    %c0_17 = arith.constant 0 : index
    %c0_18 = arith.constant 0 : index
    %24 = vector.load %arg8[%c0_17, %c0_18] : memref<4x32xf32, #tpu.memory_space<vmem>>, vector<4x32xf32>
    %25 = vector.shape_cast %19 : vector<1x32xf32> to vector<1x1x32xf32>
    %26 = vector.shape_cast %24 : vector<4x32xf32> to vector<1x4x32xf32>
    %27 = vector.broadcast %25 : vector<1x1x32xf32> to vector<1x4x32xf32>
    %28 = arith.mulf %27, %26 : vector<1x4x32xf32>
    %29 = vector.shape_cast %28 : vector<1x4x32xf32> to vector<4x32xf32>
    %cst_19 = arith.constant dense<0.000000e+00> : vector<4x16xf32>
    %30 = tpu.matmul %29, %22, %cst_19 {dimension_numbers = #tpu.dot_dimension_numbers<[1], [1], [0], [0], [0, 0, 1, 0], [], []>} : vector<4x32xf32>, vector<16x32xf32>, vector<4x16xf32> -> vector<4x16xf32>
    %c0_20 = arith.constant 0 : index
    %c0_21 = arith.constant 0 : index
    %31 = vector.load %arg9[%c0_20, %c0_21] : memref<4x16xf32, #tpu.memory_space<vmem>>, vector<4x16xf32>
    %32 = arith.addf %30, %31 : vector<4x16xf32>
    %33 = vector.shape_cast %20 : vector<1x32xf32> to vector<1x1x32xf32>
    %34 = vector.broadcast %33 : vector<1x1x32xf32> to vector<1x4x32xf32>
    %35 = arith.mulf %28, %34 : vector<1x4x32xf32>
    %cst_22 = arith.constant dense<0.000000e+00> : vector<1x4xf32>
    %36 = vector.multi_reduction <add>, %35, %cst_22 [2] : vector<1x4x32xf32> to vector<1x4xf32>
    %37 = vector.shape_cast %36 : vector<1x4xf32> to vector<4x1xf32>
    %cst_23 = arith.constant dense<0xFF800000> : vector<4xf32>
    %38 = vector.multi_reduction <maximumf>, %32, %cst_23 [1] : vector<4x16xf32> to vector<4xf32>
    %39 = vector.shape_cast %38 : vector<4xf32> to vector<4x1xf32>
    %40 = arith.maximumf %39, %37 : vector<4x1xf32>
    %41 = vector.broadcast %40 : vector<4x1xf32> to vector<4x16xf32>
    %42 = arith.subf %32, %41 : vector<4x16xf32>
    %43 = math.exp %42 : vector<4x16xf32>
    %44 = arith.subf %37, %40 : vector<4x1xf32>
    %45 = math.exp %44 : vector<4x1xf32>
    %cst_24 = arith.constant dense<0.000000e+00> : vector<4xf32>
    %46 = vector.multi_reduction <add>, %43, %cst_24 [1] : vector<4x16xf32> to vector<4xf32>
    %47 = vector.shape_cast %46 : vector<4xf32> to vector<4x1xf32>
    %48 = arith.addf %45, %47 : vector<4x1xf32>
    %49 = tpu.reciprocal %48 {approx = true} : vector<4x1xf32> -> vector<4x1xf32>
    %50 = arith.mulf %48, %49 : vector<4x1xf32>
    %cst_25 = arith.constant 2.000000e+00 : f32
    %51 = vector.broadcast %cst_25 : f32 to vector<4x1xf32>
    %52 = arith.subf %51, %50 : vector<4x1xf32>
    %53 = arith.mulf %49, %52 : vector<4x1xf32>
    %54 = vector.broadcast %53 : vector<4x1xf32> to vector<4x16xf32>
    %55 = arith.mulf %43, %54 : vector<4x16xf32>
    %56 = arith.mulf %45, %53 : vector<4x1xf32>
    %cst_26 = arith.constant dense<0.000000e+00> : vector<4x32xf32>
    %57 = tpu.matmul %55, %23, %cst_26 {dimension_numbers = #tpu.dot_dimension_numbers<[1], [0], [0], [1], [0, 0, 1, 1], [], []>} : vector<4x16xf32>, vector<16x32xf32>, vector<4x32xf32> -> vector<4x32xf32>
    %58 = vector.shape_cast %57 : vector<4x32xf32> to vector<1x4x32xf32>
    %59 = vector.shape_cast %56 : vector<4x1xf32> to vector<1x4x1xf32>
    %60 = vector.shape_cast %21 : vector<1x32xf32> to vector<1x1x32xf32>
    %61 = vector.broadcast %59 : vector<1x4x1xf32> to vector<1x4x32xf32>
    %62 = vector.broadcast %60 : vector<1x1x32xf32> to vector<1x4x32xf32>
    %63 = arith.mulf %61, %62 : vector<1x4x32xf32>
    %64 = arith.addf %58, %63 : vector<1x4x32xf32>
    %65 = vector.shape_cast %24 : vector<4x32xf32> to vector<1x4x32xf32>
    %66 = arith.mulf %64, %65 : vector<1x4x32xf32>
    %cst_27 = arith.constant dense<0.000000e+00> : vector<1x32xf32>
    %67 = vector.multi_reduction <add>, %66, %cst_27 [1] : vector<1x4x32xf32> to vector<1x32xf32>
    %c0_28 = arith.constant 0 : index
    %c0_29 = arith.constant 0 : index
    %68 = vector.load %arg6[%c0_28, %c0_29] : memref<32x16xf32, #tpu.memory_space<vmem>>, vector<32x16xf32>
    %cst_30 = arith.constant dense<0.000000e+00> : vector<1x16xf32>
    %69 = tpu.matmul %67, %68, %cst_30 {dimension_numbers = #tpu.dot_dimension_numbers<[1], [0], [0], [1], [0, 0, 1, 1], [], []>} : vector<1x32xf32>, vector<32x16xf32>, vector<1x16xf32> -> vector<1x16xf32>
    %c0_31 = arith.constant 0 : index
    %c0_32 = arith.constant 0 : index
    %70 = vector.load %arg7[%c0_31, %c0_32] : memref<1x16xf32, #tpu.memory_space<vmem>>, vector<1x16xf32>
    %71 = arith.addf %69, %70 : vector<1x16xf32>
    %72 = vector.shape_cast %71 : vector<1x16xf32> to vector<1x1x16xf32>
    %c0_33 = arith.constant 0 : index
    %c0_34 = arith.constant 0 : index
    %c0_35 = arith.constant 0 : index
    %73 = vector.load %arg10[%c0_33, %c0_34, %c0_35] : memref<1x1x16xf32, #tpu.memory_space<vmem>>, vector<1x1x16xf32>
    tpu.vector_store %arg10[%c0_33, %c0_34, %c0_35], %72 {strides = array<i32>} : memref<1x1x16xf32, #tpu.memory_space<vmem>>, vector<1x1x16xf32>,
    return
  }
  func.func @transform_0(%arg0: i32) -> (i32, i32, i32) {
    %c0_i32 = arith.constant 0 : i32
    %c0_i32_0 = arith.constant 0 : i32
    %c0_i32_1 = arith.constant 0 : i32
    return %arg0, %c0_i32, %c0_i32_0 : i32, i32, i32
  }
  func.func @transform_1(%arg0: i32) -> (i32, i32) {
    %c0_i32 = arith.constant 0 : i32
    %c0_i32_0 = arith.constant 0 : i32
    %c0_i32_1 = arith.constant 0 : i32
    return %c0_i32, %c0_i32_0 : i32, i32
  }
  func.func @transform_2(%arg0: i32) -> (i32, i32) {
    %c0_i32 = arith.constant 0 : i32
    %c0_i32_0 = arith.constant 0 : i32
    %c0_i32_1 = arith.constant 0 : i32
    return %c0_i32, %c0_i32_0 : i32, i32
  }
  func.func @transform_3(%arg0: i32) -> (i32, i32) {
    %c0_i32 = arith.constant 0 : i32
    %c0_i32_0 = arith.constant 0 : i32
    %c0_i32_1 = arith.constant 0 : i32
    return %c0_i32, %c0_i32_0 : i32, i32
  }
  func.func @transform_4(%arg0: i32) -> (i32, i32) {
    %c0_i32 = arith.constant 0 : i32
    %c0_i32_0 = arith.constant 0 : i32
    %c0_i32_1 = arith.constant 0 : i32
    return %c0_i32, %c0_i32_0 : i32, i32
  }
  func.func @transform_5(%arg0: i32) -> (i32, i32) {
    %c0_i32 = arith.constant 0 : i32
    %c0_i32_0 = arith.constant 0 : i32
    %c0_i32_1 = arith.constant 0 : i32
    return %c0_i32, %c0_i32_0 : i32, i32
  }
  func.func @transform_6(%arg0: i32) -> (i32, i32) {
    %c0_i32 = arith.constant 0 : i32
    %c0_i32_0 = arith.constant 0 : i32
    %c0_i32_1 = arith.constant 0 : i32
    return %c0_i32, %c0_i32_0 : i32, i32
  }
  func.func @transform_7(%arg0: i32) -> (i32, i32) {
    %c0_i32 = arith.constant 0 : i32
    %c0_i32_0 = arith.constant 0 : i32
    %c0_i32_1 = arith.constant 0 : i32
    return %c0_i32, %c0_i32_0 : i32, i32
  }
  func.func @transform_8(%arg0: i32) -> (i32, i32) {
    %c0_i32 = arith.constant 0 : i32
    %c0_i32_0 = arith.constant 0 : i32
    %c0_i32_1 = arith.constant 0 : i32
    return %c0_i32, %c0_i32_0 : i32, i32
  }
  func.func @transform_9(%arg0: i32) -> (i32, i32, i32) {
    %c0_i32 = arith.constant 0 : i32
    %c0_i32_0 = arith.constant 0 : i32
    %c0_i32_1 = arith.constant 0 : i32
    return %arg0, %c0_i32, %c0_i32_0 : i32, i32, i32
  }
}

</mosaic_0001>

<bundles_post_ra>
// kernel: tpu_custom_call.1
= control target key start
LH: loop header
LB: loop body
LE: loop exit
PB: predicated region body
PF: predicated region fallthrough
CT: control target
= control target key end

     0   :  { %14 = vsyncpa [#allocation3], 0  ;;  %s1473_s0 = inlined_call_operand.vmem [shape: f32[2,16,32], index: 0, kind: input, shape index: {}]   ;;  %s1474_s1 = inlined_call_operand.vmem [shape: f32[1,32], index: 1, kind: input, shape index: {}]   ;;  %s1475_s2 = inlined_call_operand.vmem [shape: f32[16,32], index: 2, kind: input, shape index: {}]   ;;  %s1476_s3 = inlined_call_operand.hbm [shape: f32[32,96], index: 3, kind: input, shape index: {}]   ;;  %s1477_s4 = inlined_call_operand.hbm [shape: f32[1,96], index: 4, kind: input, shape index: {}]   ;;  %s1478_s5 = inlined_call_operand.vmem [shape: f32[32,16], index: 5, kind: input, shape index: {}]   ;;  %s1479_s6 = inlined_call_operand.vmem [shape: f32[1,16], index: 6, kind: input, shape index: {}]   ;;  %s1480_s7 = inlined_call_operand.vmem [shape: f32[4,32], index: 7, kind: input, shape index: {}]   ;;  %s1481_s8 = inlined_call_operand.vmem [shape: f32[4,16], index: 8, kind: input, shape index: {}]   ;;  %s1482_s9 = inlined_call_operand.hbm [shape: f32[2,1,16], index: 9, kind: output, shape index: {}]  }
   0x1   :  { %15 = vsyncpa [#allocation6], 0 }
   0x2   :  { %16 = vsyncpa [#allocation4], 0 }
   0x3   :  { %18 = vsyncpa [#allocation4 + $0x1], 0  ;;  %s1271_s30 = smov 0   ;;  %s1273_s10 = smov 0  }
   0x4   :  { %s1275_s11 = smov 0   ;;  %s1277_s12 = smov 0  }
   0x5 LB: > { %s1292_s13 = sadd.s32 4294967295, %s1210_s12   ;;  %s927_s14 = sadd.s32 4294967294, %s1210_s12   ;;  %s1210_s12 = sphi %s1277_s12, %s1495_s12   ;;  %s1206_s11 = sphi %s1275_s11, %s1494_s11   ;;  %s1202_s10 = sphi %s1273_s10, %s1493_s10   ;;  %s1198_s30 = sphi %s1271_s30, %s1492_s30  }
   0x6   : > { %s1296_s15 = sadd.s32 1, %s1210_s12   ;;  %s225_s16 = sadd.s32 1, %s1206_s11 }
   0x7   : > { %s222_s17 = ssub.s32 %s1210_s12, %s1296_s15  ;;  %p235_p0 = scmp.ne.s32.totalorder %s1206_s11, %s1202_s10 }
   0x8   : > { %p223_p1 = scmp.eq.s32.totalorder %s222_s17, 0  ;;  %p236_p2 = scmp.eq.s32.totalorder %s1292_s13, 1 }
   0x9   : > { %p241_p3 = scmp.ne.s32.totalorder %s1202_s10, %s1198_s30  ;;  %p242_p4 = scmp.eq.s32.totalorder %s927_s14, 1 }
   0xa   : > { %s1307_s18 = scalar_select %p223_p1, %s1206_s11, %s225_s16  }
   0xb   : > { %p1309_p5 = por %p236_p2, %p235_p0  ;;  %p1313_p6 = por %p242_p4, %p241_p3 }
   0xc   : > { %p928_p7 = scmp.ge.s32.totalorder %s1210_s12, 1  ;;  %p249_p8 = scmp.lt.s32.totalorder %s1210_s12, 3 }
   0xd   : > { %p1483_p9 = scmp.eq.s32.totalorder %s1292_s13, 0  ;;  %s1212_s22 = smov [#allocation2]  }
   0xe   : > { %p1320_p10 = pnand %p928_p7, %p249_p8  ;;  %s267_s23 = sshll.u32 %s1212_s22, 4  ;;  %s268_s23 = int_to_ptr.vmem [resolvable:$true] %s267_s23 }
   0xf   : > { %s1213_s25 = smov [#allocation5]   ;;  %s1101_s27 = scalar_lea.vmem %s268_s23, 512 }
  0x10   : > { %p1028_p11 = pneg %p1320_p10  ;;  %s281_s26 = sshll.u32 %s1213_s25, 4  ;;  %s282_s26 = int_to_ptr.vmem [resolvable:$true] %s281_s26 }
  0x11   : > { %p1102_p0 = scmp.ne.s32.totalorder %s268_s23, %s1101_s27  ;;  %p1109_p3 = scmp.lt.s32.totalorder %s268_s23, %s268_s23 }
  0x12   : > { %p1328_p12 = pnand %p1483_p9, %p1028_p11  ;;  %p1110_p4 = scmp.lt.s32.totalorder %s1101_s27, %s1101_s27 }
  0x14   : > { %p1092_p13 = pneg %p1328_p12  ;;  %p1111_p7 = por %p1110_p4, %p1109_p3 }
  0x16   : > { %p1104_p1 = pnand %p1102_p0, %p1092_p13 }
  0x18   : > { %p1105_p2 = pneg %p1104_p1 }
  0x1a   : > { %p1112_p8 = pnand %p1111_p7, %p1105_p2 }
  0x1c   : > { %1115 = shalt.err (!%p1112_p8)
}
  0x1d   : > { %s1214_s28 = smov 128   ;;  %s1215_s29 = smov 8  }
  0x1e   : > { %1031 = dma.hbm_to_vmem [thread:$0]  (!%p1328_p12), %s1476_s3, 512, %s268_s23, [#allocation3], %s1214_s28, %s1214_s28, %s1215_s29  }
  0x1f   : > { %s1127_s17 = scalar_lea.vmem %s282_s26, 16  ;;  %s1134_s22 = scalar_lea.vmem %s282_s26, 32 }
  0x20   : > { %p1128_p11 = scmp.ne.s32.totalorder %s282_s26, %s1127_s17  ;;  %p1135_p9 = scmp.lt.s32.totalorder %s282_s26, %s282_s26 }
  0x21   : > { %p1136_p3 = scmp.lt.s32.totalorder %s1134_s22, %s1127_s17 }
  0x22   : > { %p1130_p0 = pnand %p1128_p11, %p1092_p13 }
  0x23   : > { %p1137_p2 = por %p1136_p3, %p1135_p9 }
  0x24   : > { %p1131_p1 = pneg %p1130_p0 }
  0x26   : > { %p1138_p4 = pnand %p1137_p2, %p1131_p1 }
  0x28   : > { %1141 = shalt.err (!%p1138_p4)
}
  0x29   : > { %1034 = dma.hbm_to_vmem [thread:$0]  (!%p1328_p12), %s1477_s4, 16, %s282_s26, [#allocation6]  }
  0x2a   : > { %314 = sbr.rel (%p1320_p10) target bundleno = 1313 (0x521), region = 56  ;;  %p1488_p7 = scmp.eq.s32.totalorder (!%p1320_p10), %s1292_s13, 0 }
  0x2f   : > { %1185 = dma.done.wait (%p1488_p7), [#allocation3], 512   ;;  %p1489_p13 = pmov %p1488_p7 }
  0x30   : > { %p1490_p8 = pmov %p1488_p7 }
  0x31   : > { %1187 = vsyncadd (%p1489_p13), [#allocation3], 4294966784 }
  0x32   : > { %1189 = dma.done.wait (%p1490_p8), [#allocation6], 16   ;;  %p1491_p9 = pmov %p1488_p7 }
  0x33   : > { %p353_p11 = scmp.lt.s32.totalorder %s1292_s13, 1  ;;  %v1216_v0 = vmov 0.0   ;;  %vm1217_vm0 = vmmov 0   ;;  %vm360_vm1 = vcmask 261120   ;;  %v381_v1 = vld [vmem:[#allocation2 + $0x18] sm:$0xff]  ;;  %v380_v2 = vld [vmem:[#allocation2 + $0x10] sm:$0xff]  ;;  %v457_v23 = vlaneseq }
  0x34   : > { %1191 = vsyncadd (%p1491_p9), [#allocation6], 4294967280  ;;  %971 = vmatprep.subr.mxu0 %v1216_v0  ;;  %979 = vmatprep.mubr.msk.f32.mxu0 %vm1217_vm0, %v1216_v0  ;;  %v379_v5 = vld [vmem:[#allocation2 + $0x8] sm:$0xff]  ;;  %v374_v8 = vld [vmem:[%s1475_s2] sm:$0xff]  ;;  %s1218_s27 = smov 96   ;;  %vm638_vm2 = vcmask 257024  }
  0x35   : > { %s354_s21 = scalar_select %p353_p11, %s1292_s13, 1  ;;  %982 = vmatprep.subr.mxu1 %v381_v1  ;;  %972 = vmatpush3.msra.mxu0 %v381_v1  ;;  %v375_v9 = vld [vmem:[%s1475_s2 + $0x8] sm:$0xff]  ;;  %v378_v12 = vld [vmem:[#allocation2] sm:$0xff]  ;;  %v458_v24 = vshrl.u32 %v457_v23, 7  ;;  %vm642_vm3 = vcmask 125952   ;;  %vm669_vm4 = vcmask 130048  }
  0x36   : > { %983 = vmatpush3.msra.mxu1 %v381_v1  ;;  %973 = vmatprep.subr.mxu0 %v1216_v0  ;;  %v372_v20 = vld [vmem:[%s1474_s1] sm:$0x1]  ;;  %s1219_s24 = smov 64   ;;  %vm835_vm5 = vcmask 122880  }
  0x37   : > { %s948_s23 = sshll.u32 %s354_s21, 4  ;;  %984 = vmatprep.subr.mxu1 %v380_v2  ;;  %974 = vmatpush3.msra.mxu0 %v380_v2  ;;  %v459_v25 = vsub.s32 0, %v458_v24  ;;  %v382_v26 = vld [vmem:[#allocation5] sm:$0x1] }
  0x38   : > { %s357_s28 = scalar_lea.vmem %s1473_s0, %s948_s23  ;;  %985 = vmatpush3.msra.mxu1 %v380_v2  ;;  %975 = vmatprep.subr.mxu0 %v1216_v0  ;;  %v1394_v37 = vld [vmem:[%s1480_s7] sm:$0xf]  ;;  %s351_s23 = sand.u32 1, %s1202_s10  }
  0x39   : > { %v358_v3 = vld [vmem:[%s357_s28] sm:$0xff]  ;;  %v359_v4 = vld [vmem:[%s357_s28 + $0x8] sm:$0xff]  ;;  %986 = vmatprep.subr.mxu1 %v379_v5  ;;  %976 = vmatpush3.msra.mxu0 %v379_v5  ;;  %v460_v27 = vrot.slane %v382_v26, %v459_v25  ;;  %s945_s28 = sshll.u32 %s1292_s13, 4  ;;  %s352_s29 = scalar_lea.vmem [#allocation7], %s351_s23 }
  0x3a   : > { %v361_v6 = vsel %vm360_vm1, %v358_v3, 0.0  ;;  %v362_v7 = vsel %vm360_vm1, %v359_v4, 0.0  ;;  %v376_v11 = vadd.f32 %v374_v8, %v358_v3  ;;  %v377_v14 = vadd.f32 %v375_v9, %v359_v4  ;;  %987 = vmatpush3.msra.mxu1 %v379_v5  ;;  %977 = vmatprep.subr.mxu0 %v1216_v0  ;;  %v549_v45 = vld [vmem:[%s1481_s8] sm:$0xf]  ;;  %v758_v8 = vld [vmem:[%s1478_s5 + $0x8] sm:$0xff]  ;;  %s850_s14 = sshll.u32 %s352_s29, 4  ;;  %s1438_s22 = scalar_lea.hbm %s1482_s9, %s945_s28  ;;  %s851_s14 = int_to_ptr.vmem [resolvable:$true] %s850_s14 }
  0x3b   : > { %v363_v10 = vadd.f32 %v362_v7, %v361_v6  ;;  %988 = vmatprep.subr.mxu1 %v378_v12  ;;  %978 = vmatpush3.msra.mxu0 %v378_v12  ;;  %v760_v6 = vld [vmem:[%s1478_s5 + $0x18] sm:$0xff]  ;;  %v759_v7 = vld [vmem:[%s1478_s5 + $0x10] sm:$0xff]  ;;  %v757_v9 = vld [vmem:[%s1478_s5] sm:$0xff]  ;;  %s838_s25 = scalar_lea.sflag [#allocation4], %s351_s23  ;;  %s1220_s13 = smov [#allocation7]  }
  0x3c   : > { %990 = vmatprep.mubr.msk.f32.mxu1 %vm360_vm1, %v376_v11  ;;  %989 = vmatpush3.msra.mxu1 %v378_v12  ;;  %s1146_s21 = sshll.u32 %s1220_s13, 4  ;;  %s1147_s21 = int_to_ptr.vmem [resolvable:$false] %s1146_s21 }
  0x3d   : > { %v364_v13 = vrot.slane %v363_v10, 4  ;;  %991 = vmatmul.mubr.msk.f32.vlgmr.msra.gmra.mxu1 %vm360_vm1, %v377_v14  ;;  %993 = vmatprep.subr.mxu0 %v1216_v0  ;;  %p1149_p1 = scmp.lt.s32.totalorder %s851_s14, %s1147_s21 }
  0x3e   : > { %1000 = vmatprep.subr.mxu1 %v1216_v0  ;;  %1004 = vmatprep.mubr.msk.f32.mxu1 %vm1217_vm0, %v1216_v0 }
  0x3f   : > { %v365_v15 = vadd.f32 %v364_v13, %v363_v10 }
  0x41   : > { %v366_v16 = vrot.slane %v365_v15, 2 }
  0x43   : > { %v367_v17 = vadd.f32 %v366_v16, %v365_v15 }
  0x45   : > { %v368_v18 = vrot.slane %v367_v17, 1 }
  0x47   : > { %v369_v19 = vadd.f32 %v368_v18, %v367_v17 }
  0x49   : > { %v371_v21 = vmul.f32 0.0625, %v369_v19 }
  0x4b   : > { %v373_v22 = vadd.f32 %v372_v20, %v371_v21 }
  0x4d   : > { %980 = vmatmul.mubr.msk.f32.vlgmr.msra.gmra.mxu0 %vm360_vm1, %v373_v22 }
  0x4e   : > { %997 = vmatprep.mubr.msk.f32.mxu0 %vm1217_vm0, %v1216_v0 }
  0xfd   : > { %v992_v28 = vpop.f32.mrf.mxu1 }
  0xfe   : > { %v540_v29 = vadd.f32 %v992_v28, %v460_v27 }
  0xff   : > { %v534_v30 = vpop.f32.mrf.mxu1 }
 0x100   : > { %554 = vrot.lane.b32.xlu0 %v540_v29, %s1218_s27  ;;  %v535_v31 = vadd.f32 %v534_v30, %v460_v27 }
 0x104   : > { %552 = vrot.lane.b32.xlu0 %v535_v31, %s1218_s27 }
 0x10d   : > { %v452_v32 = vpop.f32.mrf.mxu0 }
 0x10e   : > { %v453_v33 = vadd.f32 %v452_v32, %v382_v26 }
 0x10f   : > { %v981_v34 = vpop.f32.mrf.mxu0 }
 0x110   : > { %v547_v35 = vrot.slane %v453_v33, %v459_v25 }
 0x112   : > { %634 = vrot.lane.b32.xlu1 %v547_v35, %s1218_s27  ;;  %v548_v38 = vmul.f32 %v547_v35, %v1394_v37  ;;  %s1142_s27 = scalar_lea.vmem %s851_s14, 16 }
 0x113   : > { %p1143_p10 = scmp.ne.s32.totalorder %s851_s14, %s1142_s27 }
 0x115   : > { %p1144_p12 = pnand %p1143_p10, %p1309_p5 }
 0x117   : > { %p1145_p0 = pneg %p1144_p12 }
 0x172   : > { %v555_v36 = vpop.permute.xlu0 %554 }
 0x173   : > { %994 = vmatpush3.xpose.msk.msra.mxu0 %vm360_vm1, %v555_v36 }
 0x174   : > { %995 = vmatprep.subr.mxu0 %v1216_v0 }
 0x176   : > { %v553_v39 = vpop.permute.xlu0 %552 }
 0x177   : > { %996 = vmatpush3.xpose.msk.msra.mxu0 %vm360_vm1, %v553_v39 }
 0x17a   : > { %998 = vmatmul.mubr.msk.f32.vlgmr.msra.gmra.mxu0 %vm360_vm1, %v548_v38 }
 0x184   : > { %v635_v40 = vpop.permute.xlu1 %634 }
 0x185   : > { %v637_v41 = vmul.f32 %v635_v40, %v548_v38 }
 0x187   : > { %v639_v42 = vsel %vm638_vm2, %v637_v41, 0.0 }
 0x188   : > { %640 = vadd.xlane.f32.xlu1 %v639_v42 }
 0x199   : > { %665 = vrot.lane.b32.xlu1 %v540_v29, %s1219_s24 }
 0x211   : > { %v641_v43 = vpop.xlane.xlu1 %640 }
 0x215   : > { %v666_v44 = vpop.permute.xlu1 %665 }
 0x216   : > { %1001 = vmatpush3.msra.mxu1 %v666_v44 }
 0x217   : > { %1002 = vmatprep.subr.mxu1 %v1216_v0 }
 0x23a   : > { %v629_v46 = vpop.f32.mrf.mxu0 }
 0x23b   : > { %v630_v47 = vadd.f32 %v629_v46, %v549_v45 }
 0x23c   : > { %v999_v48 = vpop.f32.mrf.mxu0 }
 0x23d   : > { %v643_v49 = vsel %vm642_vm3, %v630_v47, -inf }
 0x23e   : > { %644 = vmax.xlane.f32.xlu0 %v643_v49 }
 0x2c7   : > { %v645_v50 = vpop.xlane.xlu0 %644 }
 0x2c8   : > { %v646_v51 = vmax.f32 %v645_v50, %v641_v43 }
 0x2ca   : > { %v647_v52 = vsub.f32 %v630_v47, %v646_v51  ;;  %v650_v56 = vsub.f32 %v641_v43, %v646_v51 }
 0x2cc   : > { %v648_v53 = vmul.f32 1.442695, %v647_v52  ;;  %v651_v57 = vmul.f32 1.442695, %v650_v56 }
 0x2ce   : > { %1084 = vpow2.f32 %v648_v53 }
 0x2cf   : > { %1086 = vpow2.f32 %v651_v57 }
 0x2db   : > { %v1085_v54 = vpop.eup %1084 }
 0x2dc   : > { %v653_v55 = vsel %vm642_vm3, %v1085_v54, 0.0  ;;  %v1087_v58 = vpop.eup %1086 }
 0x2dd   : > { %654 = vadd.xlane.f32.xlu0 %v653_v55 }
 0x2f3   : > { %663 = vrot.lane.b32.xlu0 %v535_v31, %s1219_s24 }
 0x366   : > { %v655_v59 = vpop.xlane.xlu0 %654 }
 0x367   : > { %v656_v60 = vadd.f32 %v1087_v58, %v655_v59 }
 0x369   : > { %1088 = vrcp.f32 %v656_v60 }
 0x36a   : > { %v664_v61 = vpop.permute.xlu0 %663 }
 0x36b   : > { %1003 = vmatpush3.msra.mxu1 %v664_v61 }
 0x36c   : > { %1007 = vmatprep.subr.mxu1 %v1216_v0 }
 0x376   : > { %v1089_v62 = vpop.eup %1088 }
 0x377   : > { %v658_v63 = vmul.f32 %v1089_v62, %v656_v60 }
 0x379   : > { %v659_v1 = vsub.f32 2.0, %v658_v63 }
 0x37b   : > { %v660_v2 = vmul.f32 %v1089_v62, %v659_v1 }
 0x37d   : > { %v661_v3 = vmul.f32 %v1085_v54, %v660_v2  ;;  %v662_v4 = vmul.f32 %v1087_v58, %v660_v2 }
 0x37f   : > { %1005 = vmatmul.mubr.msk.f32.vlgmr.msra.gmra.mxu1 %vm669_vm4, %v661_v3  ;;  %v743_v5 = vmul.f32 %v662_v4, %v547_v35 }
 0x380   : > { %1015 = vmatprep.mubr.msk.f32.mxu1 %vm1217_vm0, %v1216_v0  ;;  %1008 = vmatpush3.msra.mxu1 %v760_v6 }
 0x381   : > { %745 = vrot.lane.b32.xlu1 %v743_v5, %s1219_s24  ;;  %1009 = vmatprep.subr.mxu1 %v1216_v0  ;;  %s1148_s24 = scalar_lea.vmem %s1147_s21, 32 }
 0x382   : > { %1010 = vmatpush3.msra.mxu1 %v759_v7  ;;  %p1150_p3 = scmp.lt.s32.totalorder %s1148_s24, %s1142_s27 }
 0x383   : > { %1011 = vmatprep.subr.mxu1 %v1216_v0 }
 0x384   : > { %1012 = vmatpush3.msra.mxu1 %v758_v8  ;;  %p1151_p2 = por %p1150_p3, %p1149_p1 }
 0x385   : > { %1013 = vmatprep.subr.mxu1 %v1216_v0  ;;  %v761_v0 = vld [vmem:[%s1479_s6] sm:$0x1] }
 0x386   : > { %1014 = vmatpush3.msra.mxu1 %v757_v9  ;;  %p1152_p4 = pnand %p1151_p2, %p1145_p0 }
 0x3f3   : > { %v746_v10 = vpop.permute.xlu1 %745 }
 0x43f   : > { %v739_v11 = vpop.f32.mrf.mxu1 }
 0x440   : > { %v748_v12 = vadd.f32 %v746_v10, %v739_v11 }
 0x441   : > { %v1006_v13 = vpop.f32.mrf.mxu1 }
 0x442   : > { %v749_v14 = vmul.f32 %v748_v12, %v1394_v37 }
 0x444   : > { %v750_v15 = vsel %vm638_vm2, %v749_v14, 0.0 }
 0x445   : > { %v751_v16 = vrot.slane %v750_v15, 4 }
 0x447   : > { %v752_v17 = vadd.f32 %v751_v16, %v750_v15 }
 0x449   : > { %v753_v18 = vrot.slane %v752_v17, 2 }
 0x44b   : > { %v754_v19 = vadd.f32 %v753_v18, %v752_v17 }
 0x44d   : > { %v755_v20 = vrot.slane %v754_v19, 1 }
 0x44f   : > { %v756_v21 = vadd.f32 %v755_v20, %v754_v19 }
 0x451   : > { %1016 = vmatmul.mubr.msk.f32.vlgmr.msra.gmra.mxu1 %vm360_vm1, %v756_v21 }
 0x511   : > { %v831_v22 = vpop.f32.mrf.mxu1 }
 0x512   : > { %v832_v23 = vadd.f32 %v831_v22, %v761_v0 }
 0x513   : > { %v1017_v24 = vpop.f32.mrf.mxu1 }
 0x514   : > { %836 = vst.msk [vmem:[%s352_s29] sm:$0x1] %vm835_vm5, %v832_v23 }
 0x515   : > { %1155 = shalt.err (!%p1152_p4)
}
 0x516   : > { %s1156_s26 = scalar_lea.hbm %s1438_s22, 16  ;;  %s1160_s29 = scalar_lea.hbm %s1482_s9, 32 }
 0x517   : > { %p1157_p7 = scmp.ne.s32.totalorder %s1438_s22, %s1156_s26  ;;  %p1161_p9 = scmp.lt.s32.totalorder %s1438_s22, %s1482_s9 }
 0x518   : > { %p1162_p11 = scmp.lt.s32.totalorder %s1160_s29, %s1156_s26 }
 0x519   : > { %p1158_p13 = pnand %p1157_p7, %p1309_p5 }
 0x51a   : > { %p1163_p10 = por %p1162_p11, %p1161_p9 }
 0x51b   : > { %p1159_p8 = pneg %p1158_p13 }
 0x51d   : > { %p1164_p12 = pnand %p1163_p10, %p1159_p8 }
 0x51f   : > { %1167 = shalt.err (!%p1164_p12)
}
 0x520   : > { %1026 = dma.vmem_to_hbm [thread:$0]  (%p1309_p5), %s851_s14, 16, %s1438_s22, %s838_s25  }
 0x521 PF: > { %p1043_p0 = scmp.ge.s32.totalorder %s1210_s12, 2  ;;  %s862_s27 = sand.u32 1, %s1198_s30  }
 0x522   : > { %s863_s13 = scalar_lea.sflag [#allocation4], %s862_s27 }
 0x523   : > { %p1036_p1 = pnand %p1043_p0, %p1313_p6 }
 0x525   : > { %p1037_p3 = pneg %p1036_p1 }
 0x527   : > { %1193 = dma.done.wait (%p1037_p3), %s863_s13, 16  }
 0x528   : > { %1195 = vsyncadd (%p1037_p3), %s863_s13, 4294967280  ;;  %p21_p2 = scmp.ge.s32.totalorder %s1296_s15, 4   ;;  %s1492_s30 = smov %s1202_s10 }
 0x529   : > { %s1493_s10 = smov %s1206_s11  ;;  %s1494_s11 = smov %s1307_s18 }
 0x52a   : > { %s1495_s12 = smov %s1296_s15  ;;  %23 = sbr.rel (!%p21_p2) target bundleno = 5 (0x5), region = 100 }
 0x52f   :  { %867 = vsyncpa [#allocation3], 1 }
 0x530   :  { %869 = vsyncpa [#allocation3 + $0x1], 1 }
 0x531   :  { %870 = vsyncpa [#allocation6], 1 }
 0x532   :  { %871 = vsyncpa [#allocation4], 1 }
 0x533   :  { %873 = vsyncpa [#allocation4 + $0x1], 1 }

</bundles_post_ra>
